<compile_context>
chip_gen: v6e
topology: v6e:2x2x1
jax: 0.10.0
libtpu: 0.0.40
codegen_flags: <defaults>
</compile_context>

<pallas_src>
import jax
import jax.numpy as jnp
from jax.experimental import pallas as pl
from jax.experimental.pallas import tpu as pltpu

_MIB = 1024 * 1024


def _cdiv(a, b):
    return -(-a // b)


def _round_up(x, m):
    return ((x + m - 1) // m) * m


def _round_down(x, m):
    return (x // m) * m


def _vmem_capacity_bytes():
    """Physical VMEM per TensorCore; conservative fallback if the query fails."""
    try:
        return int(pltpu.get_tpu_info().vmem_capacity_bytes)
    except Exception:
        return 64 * _MIB  # v7x per-core size == safe lower bound for all generations


def _pick_tiling(B, F):
    """Choose (tb, num_tiles, padded_B) for the batch-tiled GEMV.

    * x block VMEM footprint is tb * round_up(F, 128) * 4 bytes (minor dim is
      lane-padded in VMEM) and is double-buffered by Pallas.
    * Budget ~1/8 of physical VMEM per block, clamped to [4 MiB, 16 MiB]
      (v5e/v6e -> 16 MiB, v7x -> 8 MiB).
    * tb capped at 8192 so the (tb,1) reduction intermediate and its XLU
      relayout to the lane-dense (1, tb) output stay bounded.
    * Multi-tile runs need tb % 128 == 0 (lane-dense out block constraint).
    * For B >= 256, always produce >= 2 tiles so both v7x cores are used.
    """
    cap = _vmem_capacity_bytes()
    block_budget = min(16 * _MIB, max(4 * _MIB, cap // 8))
    row_bytes_vmem = 4 * _round_up(F, 128)

    tb = block_budget // row_bytes_vmem
    tb = min(tb, 8192)
    tb = max(8, _round_down(tb, 8))

    if B <= tb:
        if B >= 256:
            tb_split = _round_up(_cdiv(B, 2), 128)
            tb = tb_split if tb_split < B else B
        else:
            tb = B  # single full-extent tile (tiny problem)
    else:
        tb = max(128, _round_down(tb, 128))

    num_tiles = _cdiv(B, tb)
    return tb, num_tiles, num_tiles * tb


def _vmem_need_bytes(tb, F):
    lanes = _round_up(F, 128)
    x_block = tb * lanes * 4          # lane-padded x tile
    w_block = 8 * lanes * 4           # (1, F) -> sublane-padded
    o_block = 8 * tb * 4              # (1, tb) -> sublane-padded
    return 2 * (x_block + w_block + o_block) + 2 * _MIB


def _linear_kernel(x_ref, w_ref, b_ref, o_ref):
    # x_ref: (TB, F) VMEM (f32 or bf16), w_ref: (1, F) f32 VMEM (grid-resident),
    # b_ref: (1, 1) f32 SMEM, o_ref: (1, TB) f32 VMEM (lane-dense output row).
    x = x_ref[...].astype(jnp.float32)             # force f32 accumulation (bf16-safe)
    prod = x * w_ref[...]                          # VPU elementwise (broadcast over rows)
    acc = jnp.sum(prod, axis=-1, keepdims=True)    # (TB, 1) lane reduction (XLU)
    row = jnp.transpose(acc + b_ref[0, 0])         # (1, TB): lane-dense via XLU relayout
    o_ref[...] = row.astype(o_ref.dtype)


def prepare_params(weight, bias):
    """One-time parameter prep: keep PyTorch (1, F) weight layout, bias -> (1, 1)."""
    w = jnp.asarray(weight, dtype=jnp.float32).reshape(1, -1)
    b = jnp.asarray(bias, dtype=jnp.float32).reshape(1, 1)
    return w, b


def linear_regression_forward(x, weight_1f, bias_11):
    """y = x @ weight.T + bias  (forward of nn.Linear(input_size, 1)).

    x: (B, F) f32 or bf16; weight_1f: (1, F) f32; bias_11: (1, 1) f32.
    Returns (B, 1) f32.
    """
    B, F = x.shape
    tb, num_tiles, padded_B = _pick_tiling(B, F)
    need = _vmem_need_bytes(tb, F)

    if need > 60 * _MIB:
        # TODO(synk): add an F ("arbitrary") reduction grid axis with a VMEM
        # accumulator for extremely wide feature dims; route to XLA for now.
        y = jnp.dot(x.astype(jnp.float32), jnp.transpose(weight_1f)) + bias_11[0, 0]
        return y.astype(jnp.float32)

    vmem_limit = int(min(64 * _MIB, max(32 * _MIB, need)))

    out_row = pl.pallas_call(
        _linear_kernel,
        out_shape=jax.ShapeDtypeStruct((1, padded_B), jnp.float32),
        grid=(num_tiles,),
        in_specs=[
            pl.BlockSpec((tb, F), lambda i: (i, 0)),               # x: tiled over batch
            pl.BlockSpec((1, F), lambda i: (0, 0)),                # weight: VMEM-resident
            pl.BlockSpec(memory_space=pltpu.MemorySpace.SMEM),     # bias: scalar path
        ],
        out_specs=pl.BlockSpec((1, tb), lambda i: (0, i)),         # lane-dense output row
        compiler_params=pltpu.CompilerParams(
            dimension_semantics=("parallel",),   # batch tiles shard across TensorCores
            vmem_limit_bytes=vmem_limit,
        ),
    )(x, weight_1f, bias_11)

    return out_row[0, :B].reshape(B, 1)


def linear_regression_forward_auto(x, weight_1f, bias_11):
    """Dispatch: tiny problems go straight to XLA (pallas_call overhead dominates)."""
    B, F = x.shape
    if B * F < (1 << 14):
        y = jnp.dot(x.astype(jnp.float32), jnp.transpose(weight_1f)) + bias_11[0, 0]
        return y.astype(jnp.float32)
    return linear_regression_forward(x, weight_1f, bias_11)


if __name__ == "__main__":
    key = jax.random.PRNGKey(0)
    k_x, k_w, k_b, k_x2 = jax.random.split(key, 4)

    # Case 1: small demo shape (single full-extent tile path).
    batch, input_size = 64, 16
    x = jax.random.normal(k_x, (batch, input_size), dtype=jnp.float32)
    weight = jax.random.normal(k_w, (1, input_size), dtype=jnp.float32) * 0.1
    bias = jax.random.normal(k_b, (1,), dtype=jnp.float32) * 0.1

    w_p, b_p = prepare_params(weight, bias)
    y = linear_regression_forward(x, w_p, b_p)
    jax.block_until_ready(y)
    y_ref = x @ weight.T + bias
    assert y.shape == (batch, 1)
    assert jnp.allclose(y, y_ref, atol=1e-5, rtol=1e-5)

    # Case 2: multi-tile lane-dense path with a partial last tile (B=1037, F=8).
    batch2, feat2 = 1037, 8
    x2 = jax.random.normal(k_x2, (batch2, feat2), dtype=jnp.float32)
    w2 = jax.random.normal(k_w, (1, feat2), dtype=jnp.float32) * 0.1
    b2 = jax.random.normal(k_b, (1,), dtype=jnp.float32) * 0.1
    w2_p, b2_p = prepare_params(w2, b2)
    y2 = linear_regression_forward(x2, w2_p, b2_p)
    jax.block_until_ready(y2)
    y2_ref = x2 @ w2.T + b2
    assert y2.shape == (batch2, 1)
    assert jnp.allclose(y2, y2_ref, atol=1e-5, rtol=1e-5)

    print("KERNEL_OK")
</pallas_src>

<mosaic_0001>
module attributes {stable_mosaic.version = 11 : i64} {
  func.func @_linear_kernel(%arg0: i32, %arg1: memref<64x16xf32, #tpu.memory_space<vmem>>, %arg2: memref<1x16xf32, #tpu.memory_space<vmem>>, %arg3: memref<1x1xf32, #tpu.memory_space<smem>>, %arg4: memref<1x64xf32, #tpu.memory_space<vmem>>) attributes {dimension_semantics = [#tpu.dimension_semantics<parallel>], iteration_bounds = array<i64: 1>, scalar_prefetch = 0 : i64, scratch_operands = 0 : i64, tpu.core_type = #tpu.core_type<tc>, window_params = [{transform_indices = @transform_0, window_bounds = array<i64: 64, 16>}, {pipeline_mode = #tpu.pipeline_mode<synchronous>, transform_indices = @transform_1, window_bounds = array<i64: 1, 16>}, {transform_indices = @transform_2, window_bounds = array<i64: 1, 1>}, {transform_indices = @transform_3, window_bounds = array<i64: 1, 64>}]} {
    %c0 = arith.constant 0 : index
    %c0_0 = arith.constant 0 : index
    %0 = vector.load %arg1[%c0, %c0_0] : memref<64x16xf32, #tpu.memory_space<vmem>>, vector<64x16xf32>
    %c0_1 = arith.constant 0 : index
    %c0_2 = arith.constant 0 : index
    %1 = vector.load %arg2[%c0_1, %c0_2] : memref<1x16xf32, #tpu.memory_space<vmem>>, vector<1x16xf32>
    %2 = vector.broadcast %1 : vector<1x16xf32> to vector<64x16xf32>
    %3 = arith.mulf %0, %2 : vector<64x16xf32>
    %cst = arith.constant dense<0.000000e+00> : vector<64xf32>
    %4 = vector.multi_reduction <add>, %3, %cst [1] : vector<64x16xf32> to vector<64xf32>
    %5 = vector.shape_cast %4 : vector<64xf32> to vector<64x1xf32>
    %c0_3 = arith.constant 0 : index
    %c0_4 = arith.constant 0 : index
    %6 = memref.load %arg3[%c0_3, %c0_4] : memref<1x1xf32, #tpu.memory_space<smem>>
    %7 = vector.broadcast %6 : f32 to vector<64x1xf32>
    %8 = arith.addf %5, %7 : vector<64x1xf32>
    %9 = tpu.transpose %8, [1, 0] : vector<64x1xf32> -> vector<1x64xf32>
    %c0_5 = arith.constant 0 : index
    %c0_6 = arith.constant 0 : index
    %10 = vector.load %arg4[%c0_5, %c0_6] : memref<1x64xf32, #tpu.memory_space<vmem>>, vector<1x64xf32>
    tpu.vector_store %arg4[%c0_5, %c0_6], %9 {strides = array<i32>} : memref<1x64xf32, #tpu.memory_space<vmem>>, vector<1x64xf32>,
    return
  }
  func.func @transform_0(%arg0: i32) -> (i32, i32) {
    %c0_i32 = arith.constant 0 : i32
    %c0_i32_0 = arith.constant 0 : i32
    return %arg0, %c0_i32 : i32, i32
  }
  func.func @transform_1(%arg0: i32) -> (i32, i32) {
    %c0_i32 = arith.constant 0 : i32
    %c0_i32_0 = arith.constant 0 : i32
    %c0_i32_1 = arith.constant 0 : i32
    return %c0_i32, %c0_i32_0 : i32, i32
  }
  func.func @transform_2(%arg0: i32) -> (i32, i32) {
    %c0_i32 = arith.constant 0 : i32
    %c0_i32_0 = arith.constant 0 : i32
    %c0_i32_1 = arith.constant 0 : i32
    return %c0_i32, %c0_i32_0 : i32, i32
  }
  func.func @transform_3(%arg0: i32) -> (i32, i32) {
    %c0_i32 = arith.constant 0 : i32
    %c0_i32_0 = arith.constant 0 : i32
    return %c0_i32, %arg0 : i32, i32
  }
}

</mosaic_0001>

<bundles_post_ra>
// kernel: tpu_custom_call.1
= control target key start
LH: loop header
LB: loop body
LE: loop exit
PB: predicated region body
PF: predicated region fallthrough
CT: control target
= control target key end

     0   :  { %vm39_vm0 = vcmask 130048   ;;  %s209_s0 = inlined_call_operand.vmem [shape: f32[64,16], index: 0, kind: input, shape index: {}]   ;;  %s210_s1 = inlined_call_operand.vmem [shape: f32[1,16], index: 1, kind: input, shape index: {}]   ;;  %s211_s2 = inlined_call_operand.<no memory space> [shape: f32[1,1], index: 2, kind: input, shape index: {}]   ;;  %s212_s3 = inlined_call_operand.hbm [shape: f32[1,64], index: 3, kind: output, shape index: {}]  }
   0x1   :  { %v16_v0 = vld [vmem:[%s209_s0] sm:$0xff]  ;;  %v17_v2 = vld [vmem:[%s209_s0 + $0x8] sm:$0xff]  ;;  %v18_v5 = vld [vmem:[%s209_s0 + $0x10] sm:$0xff] }
   0x2   :  { %v122_v1 = vld [vmem:[%s210_s1] ss:$0 sm:$0xff]  ;;  %v19_v6 = vld [vmem:[%s209_s0 + $0x18] sm:$0xff]  ;;  %v21_v11 = vld [vmem:[%s209_s0 + $0x28] sm:$0xff] }
   0x3   :  { %v31_v3 = vmul.f32 %v122_v1, %v16_v0  ;;  %v32_v4 = vmul.f32 %v122_v1, %v17_v2  ;;  %v33_v7 = vmul.f32 %v122_v1, %v18_v5  ;;  %v34_v8 = vmul.f32 %v122_v1, %v19_v6  ;;  %v20_v9 = vld [vmem:[%s209_s0 + $0x20] sm:$0xff] }
   0x5   :  { %v40_v10 = vsel %vm39_vm0, %v31_v3, 0.0 }
   0x6   :  { %9 = vsyncpa [#allocation4], 0  ;;  %41 = vadd.xlane.f32.xlu0 %v40_v10  ;;  %v46_v12 = vsel %vm39_vm0, %v33_v7, 0.0  ;;  %v43_v13 = vsel %vm39_vm0, %v32_v4, 0.0  ;;  %v35_v14 = vmul.f32 %v122_v1, %v20_v9  ;;  %v49_v15 = vsel %vm39_vm0, %v34_v8, 0.0  ;;  %v22_v17 = vld [vmem:[%s209_s0 + $0x30] sm:$0xff] }
   0x7   :  { %47 = vadd.xlane.f32.xlu1 %v46_v12  ;;  %v36_v16 = vmul.f32 %v122_v1, %v21_v11  ;;  %v23_v18 = vld [vmem:[%s209_s0 + $0x38] sm:$0xff]  ;;  %v37_v20 = vmul.f32 %v122_v1, %v22_v17  ;;  %v65_v25 = vstv %s211_s2  ;;  %s147_s0 = smov [#allocation3]   ;;  %vm106_vm1 = vcmask 516096  }
   0x8   :  { %v52_v19 = vsel %vm39_vm0, %v35_v14, 0.0  ;;  %v38_v22 = vmul.f32 %v122_v1, %v23_v18  ;;  %s114_s2 = sshll.u32 %s147_s0, 4  ;;  %s115_s2 = int_to_ptr.vmem [resolvable:$true] %s114_s2 }
   0x9   :  { %v55_v21 = vsel %vm39_vm0, %v36_v16, 0.0  ;;  %v58_v23 = vsel %vm39_vm0, %v37_v20, 0.0  ;;  %s125_s4 = scalar_lea.vmem %s115_s2, 16  ;;  %s129_s5 = scalar_lea.vmem %s115_s2, 32 }
   0xa   :  { %44 = vadd.xlane.f32.xlu0 %v43_v13  ;;  %v61_v24 = vsel %vm39_vm0, %v38_v22, 0.0  ;;  %p126_p0 = scmp.ne.s32.totalorder %s115_s2, %s125_s4  ;;  %p130_p1 = scmp.lt.s32.totalorder %s115_s2, %s115_s2 }
   0xb   :  { %50 = vadd.xlane.f32.xlu1 %v49_v15  ;;  %p131_p2 = scmp.lt.s32.totalorder %s129_s5, %s125_s4 }
   0xd   :  { %p132_p3 = por %p131_p2, %p130_p1 }
   0xe   :  { %53 = vadd.xlane.f32.xlu0 %v52_v19 }
   0xf   :  { %56 = vadd.xlane.f32.xlu1 %v55_v21  ;;  %p133_p4 = pnand %p132_p3, %p126_p0 }
  0x12   :  { %59 = vadd.xlane.f32.xlu0 %v58_v23 }
  0x13   :  { %62 = vadd.xlane.f32.xlu1 %v61_v24 }
  0x8f   :  { %v42_v26 = vpop.xlane.xlu0 %41 }
  0x90   :  { %v66_v27 = vadd.f32 %v65_v25, %v42_v26  ;;  %v48_v28 = vpop.xlane.xlu1 %47 }
  0x91   :  { %v68_v31 = vadd.f32 %v65_v25, %v48_v28 }
  0x92   :  { %74 = vxpose.xlu0.b32.start [1/8] (short) (narrow) %v66_v27, 8 }
  0x93   :  { %v45_v29 = vpop.xlane.xlu0 %44 }
  0x94   :  { %v67_v30 = vadd.f32 %v65_v25, %v45_v29  ;;  %v51_v32 = vpop.xlane.xlu1 %50 }
  0x95   :  { %v69_v33 = vadd.f32 %v65_v25, %v51_v32 }
  0x96   :  { %75 = vxpose.xlu0.b32.cont [2/8] (short) (narrow) %v67_v30, 8 }
  0x97   :  { %v54_v34 = vpop.xlane.xlu0 %53 }
  0x98   :  { %v70_v35 = vadd.f32 %v65_v25, %v54_v34  ;;  %v57_v36 = vpop.xlane.xlu1 %56 }
  0x99   :  { %v71_v37 = vadd.f32 %v65_v25, %v57_v36 }
  0x9a   :  { %76 = vxpose.xlu0.b32.cont [3/8] (short) (narrow) %v68_v31, 8 }
  0x9b   :  { %v60_v38 = vpop.xlane.xlu0 %59 }
  0x9c   :  { %v72_v39 = vadd.f32 %v65_v25, %v60_v38  ;;  %v63_v40 = vpop.xlane.xlu1 %62 }
  0x9d   :  { %v73_v41 = vadd.f32 %v65_v25, %v63_v40 }
  0x9e   :  { %77 = vxpose.xlu0.b32.cont [4/8] (short) (narrow) %v69_v33, 8 }
  0xa2   :  { %78 = vxpose.xlu0.b32.cont [5/8] (short) (narrow) %v70_v35, 8 }
  0xa6   :  { %79 = vxpose.xlu0.b32.cont [6/8] (short) (narrow) %v71_v37, 8 }
  0xaa   :  { %80 = vxpose.xlu0.b32.cont [7/8] (short) (narrow) %v72_v39, 8 }
  0xae   :  { %81 = vxpose.xlu0.b32.end [8/8] (short) (narrow) %v73_v41, 8 }
 0x10e   :  { %v90_v42 = vpop.trf.xlu0 }
 0x10f   :  { %107 = vst.msk [vmem:[#allocation3] sm:$0x1] %vm106_vm1, %v90_v42 }
 0x110   :  { %136 = shalt.err (!%p133_p4)
}
 0x111   :  { %117 = dma.vmem_to_hbm [thread:$0]  %s115_s2, 16, %s212_s3, [#allocation4]  }
 0x112   :  { %145 = dma.done.wait [#allocation4], 16  }
 0x113   :  { %146 = vsyncadd [#allocation4], 4294967280 }
 0x114   :  { %121 = vsyncpa [#allocation4], 1 }

</bundles_post_ra>
